<compile_context>
chip_gen: v7x
topology: tpu7x:2x2x1
jax: 0.10.0
libtpu: 0.0.40
codegen_flags: <defaults>
</compile_context>

<pallas_src>
import jax
import jax.numpy as jnp
from jax import lax
from jax.experimental import pallas as pl
from jax.experimental.pallas import tpu as pltpu


def yopo_kernel(x_ref, wt_ref, b_ref, o_ref):
    # Linear: x @ W.T, with W.T materialized once in the wrapper -> direct MXU
    # feed (no per-step transpose), f32 accumulation, then bias add.
    logits = jnp.dot(x_ref[...], wt_ref[...],
                     preferred_element_type=jnp.float32)
    logits = logits + b_ref[...].astype(jnp.float32)

    # Numerically-stable softmax over the label axis (PyTorch dim=1).
    m = jnp.max(logits, axis=-1, keepdims=True)
    e = jnp.exp(logits - m)
    denom = jnp.sum(e, axis=-1, keepdims=True)
    # Exact reciprocal of the single (tb, 1) column (negligible cost) so each
    # row sums to 1.0 to float precision.
    o_ref[...] = (e * (1.0 / denom)).astype(o_ref.dtype)


def _vmem_config():
    """Per-generation (tile budget, scoped VMEM limit) in bytes."""
    try:
        cap = pltpu.get_tpu_info().vmem_capacity_bytes
    except Exception:
        cap = 64 * 1024 * 1024  # conservative (v7x per-TC VMEM)
    if cap >= 128 * 1024 * 1024:          # v5e / v6e: 128 MiB VMEM
        return 80 * 1024 * 1024, 104 * 1024 * 1024
    return 36 * 1024 * 1024, 52 * 1024 * 1024  # v7x: 64 MiB per TC


def _pick_tile_batch(batch, vector_size, num_labels, *, max_tile_batch,
                     vmem_budget_bytes, target_x_bytes, min_grid_steps):
    """Largest batch tile that (a) fits the VMEM budget with double buffering
    (x, out, weight, bias all counted), (b) targets ~target_x_bytes per x
    buffer, (c) is a multiple of 8 (sublane constraint), (d) divides `batch`,
    and (e) leaves >= min_grid_steps grid steps when the batch allows it."""
    bytes_per_row = 2 * (vector_size + num_labels) * 4     # x + out, 2 buffers
    fixed_bytes = 2 * (num_labels * vector_size + num_labels) * 4  # weight+bias
    avail = max(vmem_budget_bytes - fixed_bytes, 8 * bytes_per_row)
    cap_vmem = avail // bytes_per_row
    cap_target = max(8, target_x_bytes // (vector_size * 4))
    tb = min(batch, cap_vmem, cap_target)
    if max_tile_batch is not None:
        tb = min(tb, max_tile_batch)
    # Keep several pipelined steps (feeds both v7x TCs, hides DMA) when the
    # batch is big enough to afford it.
    if batch >= min_grid_steps * 8:
        tb = min(tb, batch // min_grid_steps)
    tb = max(8, (tb // 8) * 8)
    # Shrink (in multiples of 8) until it divides batch.
    while tb > 8 and batch % tb != 0:
        tb -= 8
    if batch % tb != 0:
        # TODO(synk): for awkward (e.g. prime) batch sizes prefer padding the
        # batch in the wrapper over one giant block.
        tb = batch
    return tb


def yopo_classification(x, weight, bias, *, max_tile_batch=None,
                        min_grid_steps=4):
    """Forward pass of YOPOClassification.

    Args:
      x:      (batch, vector_size) float32
      weight: (num_labels, vector_size) float32  (PyTorch nn.Linear layout)
      bias:   (num_labels,) float32
    Returns:
      (batch, num_labels) float32 softmax probabilities.
    """
    batch, vector_size = x.shape
    num_labels = weight.shape[0]

    # One-time, wrapper-side layout prep (tiny tensors).
    w_t = weight.T                         # (vector_size, num_labels)
    b2d = bias.reshape(1, num_labels)      # 2-D for TPU layout

    vmem_budget_bytes, vmem_limit_bytes = _vmem_config()
    tb = _pick_tile_batch(
        batch, vector_size, num_labels,
        max_tile_batch=max_tile_batch,
        vmem_budget_bytes=vmem_budget_bytes,
        target_x_bytes=12 * 1024 * 1024,
        min_grid_steps=min_grid_steps)
    grid = (batch // tb,)

    cost = pl.CostEstimate(
        flops=2 * batch * vector_size * num_labels + 6 * batch * num_labels,
        transcendentals=batch * num_labels,
        bytes_accessed=4 * (batch * vector_size + num_labels * vector_size
                            + num_labels + batch * num_labels),
    )

    out = pl.pallas_call(
        yopo_kernel,
        out_shape=jax.ShapeDtypeStruct((batch, num_labels), x.dtype),
        grid=grid,
        in_specs=[
            # x: tiled along the batch; pipelined/double-buffered by Pallas.
            pl.BlockSpec((tb, vector_size), lambda i: (i, 0)),
            # weight^T / bias: loop-invariant, constant block index.
            pl.BlockSpec((vector_size, num_labels), lambda i: (0, 0)),
            pl.BlockSpec((1, num_labels), lambda i: (0, 0)),
        ],
        out_specs=pl.BlockSpec((tb, num_labels), lambda i: (i, 0)),
        compiler_params=pltpu.CompilerParams(
            # Batch rows are independent -> shard grid across TCs on v7x.
            dimension_semantics=("parallel",),
            vmem_limit_bytes=vmem_limit_bytes,
        ),
        cost_estimate=cost,
    )(x, w_t, b2d)
    return out


if __name__ == "__main__":
    # Small shapes consistent with the module's forward:
    #   x: (batch, vector_size), Linear(vector_size -> num_labels)
    batch = 256
    vector_size = 256
    num_labels = 16

    key = jax.random.PRNGKey(0)
    kx, kw, kb = jax.random.split(key, 3)

    x = jax.random.normal(kx, (batch, vector_size), dtype=jnp.float32)
    # Deterministic synthetic parameters (mimic nn.Linear uniform init scale).
    bound = 1.0 / (vector_size ** 0.5)
    weight = jax.random.uniform(
        kw, (num_labels, vector_size), minval=-bound, maxval=bound,
        dtype=jnp.float32)
    bias = jax.random.uniform(
        kb, (num_labels,), minval=-bound, maxval=bound, dtype=jnp.float32)

    out = yopo_classification(x, weight, bias)
    out = jax.block_until_ready(out)

    # Pure-JAX reference (highest precision matmul so the comparison is on us,
    # not on XLA's default matmul precision).
    logits_ref = lax.dot_general(
        x, weight, dimension_numbers=(((1,), (1,)), ((), ())),
        precision=lax.Precision.HIGHEST) + bias
    ref = jax.nn.softmax(logits_ref, axis=1)

    assert out.shape == (batch, num_labels)
    assert jnp.allclose(out, ref, atol=1e-3, rtol=1e-3)
    assert jnp.allclose(jnp.sum(out, axis=1), 1.0, atol=1e-3)

    print("KERNEL_OK")
</pallas_src>

<mosaic_0001>
module attributes {stable_mosaic.version = 11 : i64} {
  func.func @yopo_kernel(%arg0: i32, %arg1: memref<64x256xf32, #tpu.memory_space<vmem>>, %arg2: memref<256x16xf32, #tpu.memory_space<vmem>>, %arg3: memref<1x16xf32, #tpu.memory_space<vmem>>, %arg4: memref<64x16xf32, #tpu.memory_space<vmem>>) attributes {dimension_semantics = [#tpu.dimension_semantics<parallel>], iteration_bounds = array<i64: 4>, scalar_prefetch = 0 : i64, scratch_operands = 0 : i64, tpu.core_type = #tpu.core_type<tc>, window_params = [{transform_indices = @transform_0, window_bounds = array<i64: 64, 256>}, {pipeline_mode = #tpu.pipeline_mode<synchronous>, transform_indices = @transform_1, window_bounds = array<i64: 256, 16>}, {pipeline_mode = #tpu.pipeline_mode<synchronous>, transform_indices = @transform_2, window_bounds = array<i64: 1, 16>}, {transform_indices = @transform_3, window_bounds = array<i64: 64, 16>}]} {
    %c0 = arith.constant 0 : index
    %c0_0 = arith.constant 0 : index
    %0 = vector.load %arg1[%c0, %c0_0] : memref<64x256xf32, #tpu.memory_space<vmem>>, vector<64x256xf32>
    %c0_1 = arith.constant 0 : index
    %c0_2 = arith.constant 0 : index
    %1 = vector.load %arg2[%c0_1, %c0_2] : memref<256x16xf32, #tpu.memory_space<vmem>>, vector<256x16xf32>
    %cst = arith.constant dense<0.000000e+00> : vector<64x16xf32>
    %2 = tpu.matmul %0, %1, %cst {dimension_numbers = #tpu.dot_dimension_numbers<[1], [0], [0], [1], [0, 0, 1, 1], [], []>} : vector<64x256xf32>, vector<256x16xf32>, vector<64x16xf32> -> vector<64x16xf32>
    %c0_3 = arith.constant 0 : index
    %c0_4 = arith.constant 0 : index
    %3 = vector.load %arg3[%c0_3, %c0_4] : memref<1x16xf32, #tpu.memory_space<vmem>>, vector<1x16xf32>
    %4 = vector.broadcast %3 : vector<1x16xf32> to vector<64x16xf32>
    %5 = arith.addf %2, %4 : vector<64x16xf32>
    %cst_5 = arith.constant dense<0xFF800000> : vector<64xf32>
    %6 = vector.multi_reduction <maximumf>, %5, %cst_5 [1] : vector<64x16xf32> to vector<64xf32>
    %7 = vector.shape_cast %6 : vector<64xf32> to vector<64x1xf32>
    %8 = vector.broadcast %7 : vector<64x1xf32> to vector<64x16xf32>
    %9 = arith.subf %5, %8 : vector<64x16xf32>
    %10 = math.exp %9 : vector<64x16xf32>
    %cst_6 = arith.constant dense<0.000000e+00> : vector<64xf32>
    %11 = vector.multi_reduction <add>, %10, %cst_6 [1] : vector<64x16xf32> to vector<64xf32>
    %12 = vector.shape_cast %11 : vector<64xf32> to vector<64x1xf32>
    %cst_7 = arith.constant 1.000000e+00 : f32
    %13 = vector.broadcast %cst_7 : f32 to vector<64x1xf32>
    %14 = arith.divf %13, %12 : vector<64x1xf32>
    %15 = vector.broadcast %14 : vector<64x1xf32> to vector<64x16xf32>
    %16 = arith.mulf %10, %15 : vector<64x16xf32>
    %c0_8 = arith.constant 0 : index
    %c0_9 = arith.constant 0 : index
    %17 = vector.load %arg4[%c0_8, %c0_9] : memref<64x16xf32, #tpu.memory_space<vmem>>, vector<64x16xf32>
    tpu.vector_store %arg4[%c0_8, %c0_9], %16 {strides = array<i32>} : memref<64x16xf32, #tpu.memory_space<vmem>>, vector<64x16xf32>,
    return
  }
  func.func @transform_0(%arg0: i32) -> (i32, i32) {
    %c0_i32 = arith.constant 0 : i32
    %c0_i32_0 = arith.constant 0 : i32
    return %arg0, %c0_i32 : i32, i32
  }
  func.func @transform_1(%arg0: i32) -> (i32, i32) {
    %c0_i32 = arith.constant 0 : i32
    %c0_i32_0 = arith.constant 0 : i32
    %c0_i32_1 = arith.constant 0 : i32
    return %c0_i32, %c0_i32_0 : i32, i32
  }
  func.func @transform_2(%arg0: i32) -> (i32, i32) {
    %c0_i32 = arith.constant 0 : i32
    %c0_i32_0 = arith.constant 0 : i32
    %c0_i32_1 = arith.constant 0 : i32
    return %c0_i32, %c0_i32_0 : i32, i32
  }
  func.func @transform_3(%arg0: i32) -> (i32, i32) {
    %c0_i32 = arith.constant 0 : i32
    %c0_i32_0 = arith.constant 0 : i32
    return %arg0, %c0_i32 : i32, i32
  }
}

</mosaic_0001>

<bundles_post_ra>
// kernel: tpu_custom_call.1
= control target key start
LH: loop header
LB: loop body
LE: loop exit
PB: predicated region body
PF: predicated region fallthrough
CT: control target
= control target key end

     0   :  { %8 = vsyncpa [#allocation3], 0  ;;  %s1067_s0 = inlined_call_operand.hbm [shape: f32[256,256], index: 0, kind: input, shape index: {}]   ;;  %s1068_s1 = inlined_call_operand.vmem [shape: f32[256,16], index: 1, kind: input, shape index: {}]   ;;  %s1069_s2 = inlined_call_operand.vmem [shape: f32[1,16], index: 2, kind: input, shape index: {}]   ;;  %s1070_s3 = inlined_call_operand.vmem [shape: f32[256,16], index: 3, kind: output, shape index: {}]  }
   0x1   :  { %10 = vsyncpa [#allocation3 + $0x1], 0  ;;  %s809_s12 = smov 0   ;;  %s811_s13 = smov 0  }
   0x2   :  { %s813_s14 = smov 0   ;;  %s815_s15 = smov 0  }
   0x3 LB: > { %s526_s16 = sadd.s32 4294967295, %s784_s15   ;;  %s829_s17 = sadd.s32 1, %s784_s15   ;;  %s784_s15 = sphi %s815_s15, %s1077_s15   ;;  %s780_s14 = sphi %s813_s14, %s1076_s14   ;;  %s776_s13 = sphi %s811_s13, %s1075_s13   ;;  %s772_s12 = sphi %s809_s12, %s1074_s12  }
   0x4   : > { %s20_s18 = ssub.s32 %s784_s15, %s829_s17  ;;  %s23_s19 = sadd.s32 1, %s780_s14 }
   0x5   : > { %p21_p0 = scmp.eq.s32.totalorder %s20_s18, 0  ;;  %p30_p1 = scmp.ne.s32.totalorder %s780_s14, %s776_s13 }
   0x6   : > { %p31_p2 = scmp.eq.s32.totalorder %s784_s15, 0  ;;  %p36_p3 = scmp.ne.s32.totalorder %s776_s13, %s772_s12 }
   0x7   : > { %s839_s20 = scalar_select %p21_p0, %s780_s14, %s23_s19  }
   0x8   : > { %p32_p4 = por %p31_p2, %p30_p1  ;;  %p37_p5 = scmp.eq.s32.totalorder %s526_s16, 0 }
   0x9   : > { %p653_p6 = scmp.lt.s32.totalorder %s784_s15, 4  ;;  %s134_s22 = sand.u32 1, %s780_s14  }
   0xa   : > { %p844_p7 = por %p37_p5, %p36_p3  ;;  %s530_s23 = sshll.u32 %s134_s22, 7 }
   0xb   : > { %s542_s24 = sshll.u32 %s784_s15, 11  ;;  %s138_s28 = scalar_lea.vmem [#allocation2], %s530_s23 }
   0xc   : > { %s853_s27 = scalar_lea.hbm %s1067_s0, %s542_s24  ;;  %s146_s29 = sshll.u32 %s138_s28, 4  ;;  %s855_s29 = int_to_ptr.vmem [resolvable:$true] %s146_s29 }
   0xd   : > { %p857_p8 = pnand %p653_p6, %p32_p4  ;;  %s862_s4 = scalar_lea.sflag [#allocation3], %s134_s22 }
   0xe   : > { %s720_s5 = scalar_lea.hbm %s853_s27, 2048  ;;  %s725_s8 = scalar_lea.hbm %s1067_s0, 8192 }
   0xf   : > { %p721_p10 = scmp.ne.s32.totalorder %s853_s27, %s720_s5  ;;  %p722_p11 = pneg %p857_p8 }
  0x10   : > { %p726_p0 = scmp.lt.u32.totalorder %s853_s27, %s1067_s0  ;;  %p727_p1 = scmp.lt.u32.totalorder %s725_s8, %s720_s5 }
  0x11   : > { %p723_p12 = pnand %p722_p11, %p721_p10  ;;  %p729_p3 = scmp.lt.u32.totalorder %s720_s5, %s853_s27 }
  0x12   : > { %p728_p2 = por %p727_p1, %p726_p0 }
  0x13   : > { %p724_p13 = pneg %p723_p12 }
  0x14   : > { %p730_p4 = por %p729_p3, %p728_p2 }
  0x16   : > { %p731_p5 = pnand %p730_p4, %p724_p13 }
  0x18   : > { %734 = shalt.err (!%p731_p5)
}
  0x19   : > { %s735_s11 = scalar_lea.vmem %s855_s29, 2048  ;;  %s786_s12 = smov [#allocation2]  }
  0x1a   : > { %p736_p6 = scmp.ne.s32.totalorder %s855_s29, %s735_s11  ;;  %s740_s18 = sshll.u32 %s786_s12, 4  ;;  %s741_s18 = int_to_ptr.vmem [resolvable:$false] %s740_s18 }
  0x1b   : > { %s742_s19 = scalar_lea.vmem %s741_s18, 4096  ;;  %p743_p9 = scmp.lt.s32.totalorder %s855_s29, %s741_s18 }
  0x1c   : > { %p738_p10 = pnand %p736_p6, %p722_p11  ;;  %p744_p0 = scmp.lt.s32.totalorder %s742_s19, %s735_s11 }
  0x1e   : > { %p739_p12 = pneg %p738_p10  ;;  %p745_p1 = por %p744_p0, %p743_p9 }
  0x20   : > { %p746_p2 = pnand %p745_p1, %p739_p12 }
  0x22   : > { %749 = shalt.err (!%p746_p2)
}
  0x23   : > { %s787_s22 = smov 256   ;;  %s788_s23 = smov 16  }
  0x24   : > { %652 = dma.hbm_to_vmem [thread:$0]  (!%p857_p8), %s853_s27, 2048, %s855_s29, %s862_s4, %s787_s22, %s787_s22, %s788_s23  }
  0x25   : > { %p154_p11 = scmp.lt.s32.totalorder %s784_s15, 5  ;;  %p1073_p13 = scmp.ge.s32.totalorder %s784_s15, 1 }
  0x27   : > { %p155_p3 = pnand %p1073_p13, %p154_p11 }
  0x28   : > { %s160_s24 = sand.u32 (!%p155_p3), 1, %s776_s13  }
  0x29   : > { %158 = sbr.rel (%p155_p3) target bundleno = 637 (0x27d), region = 32  ;;  %s535_s25 = sshll.u32 (!%p155_p3), %s160_s24, 7 }
  0x2a   : > { %s161_s26 = scalar_lea.sflag (!%p155_p3), [#allocation3], %s160_s24  ;;  %s894_s28 = scalar_lea.vmem (!%p155_p3), [#allocation2], %s535_s25 }
  0x30   : > { %767 = dma.done.wait (%p844_p7), %s161_s26, 2048  }
  0x31   : > { %769 = vsyncadd (%p844_p7), %s161_s26, 4294965248  ;;  %v226_v0 = vld [vmem:[%s1068_s1 + $0x80] sm:$0xff]  ;;  %v227_v1 = vld [vmem:[%s1068_s1 + $0x88] sm:$0xff]  ;;  %vm354_vm0 = vcmask 130048  }
  0x32   : > { %v210_v2 = vld [vmem:[%s1068_s1] sm:$0xff]  ;;  %v599_v3 = vpack.c.bf16 %v227_v1, %v226_v0  ;;  %v211_v4 = vld [vmem:[%s1068_s1 + $0x8] sm:$0xff]  ;;  %v228_v5 = vld [vmem:[%s1068_s1 + $0x90] sm:$0xff] }
  0x33   : > { %v229_v6 = vld [vmem:[%s1068_s1 + $0x98] sm:$0xff]  ;;  %v601_v7 = vpack.c.bf16 %v211_v4, %v210_v2  ;;  %v212_v9 = vld [vmem:[%s1068_s1 + $0x10] sm:$0xff]  ;;  %v230_v11 = vld [vmem:[%s1068_s1 + $0xa0] sm:$0xff] }
  0x34   : > { %v603_v8 = vpack.c.bf16 %v229_v6, %v228_v5  ;;  %v213_v10 = vld [vmem:[%s1068_s1 + $0x18] sm:$0xff]  ;;  %600 = vmatprep.subr.bf16.mxu0 %v599_v3  ;;  %631 = vmatprep.subr.bf16.mxu1 %v599_v3  ;;  %v231_v12 = vld [vmem:[%s1068_s1 + $0xa8] sm:$0xff]  ;;  %v214_v15 = vld [vmem:[%s1068_s1 + $0x20] sm:$0xff] }
  0x35   : > { %602 = vmatpush3.bf16.msra.mxu0 %v601_v7  ;;  %639 = vmatpush3.bf16.msra.mxu1 %v601_v7  ;;  %v605_v13 = vpack.c.bf16 %v213_v10, %v212_v9  ;;  %v607_v14 = vpack.c.bf16 %v231_v12, %v230_v11  ;;  %v215_v16 = vld [vmem:[%s1068_s1 + $0x28] sm:$0xff]  ;;  %v232_v17 = vld [vmem:[%s1068_s1 + $0xb0] sm:$0xff]  ;;  %v233_v18 = vld [vmem:[%s1068_s1 + $0xb8] sm:$0xff] }
  0x36   : > { %604 = vmatprep.subr.bf16.mxu0 %v603_v8  ;;  %632 = vmatprep.subr.bf16.mxu1 %v603_v8  ;;  %v609_v19 = vpack.c.bf16 %v215_v16, %v214_v15  ;;  %v611_v20 = vpack.c.bf16 %v233_v18, %v232_v17  ;;  %v216_v21 = vld [vmem:[%s1068_s1 + $0x30] sm:$0xff]  ;;  %v217_v22 = vld [vmem:[%s1068_s1 + $0x38] sm:$0xff]  ;;  %v234_v23 = vld [vmem:[%s1068_s1 + $0xc0] sm:$0xff] }
  0x37   : > { %v235_v24 = vld [vmem:[%s1068_s1 + $0xc8] sm:$0xff]  ;;  %v613_v27 = vpack.c.bf16 %v217_v22, %v216_v21  ;;  %v218_v29 = vld [vmem:[%s1068_s1 + $0x40] sm:$0xff]  ;;  %v236_v31 = vld [vmem:[%s1068_s1 + $0xd0] sm:$0xff] }
  0x38   : > { %v195_v25 = vld [vmem:[%s894_s28 + $0x8] sm:$0xff]  ;;  %v615_v28 = vpack.c.bf16 %v235_v24, %v234_v23  ;;  %v237_v32 = vld [vmem:[%s1068_s1 + $0xd8] sm:$0xff]  ;;  %v220_v35 = vld [vmem:[%s1068_s1 + $0x50] sm:$0xff] }
  0x39   : > { %606 = vmatpush3.bf16.msra.mxu0 %v605_v13  ;;  %640 = vmatpush3.bf16.msra.mxu1 %v605_v13  ;;  %v203_v26 = vld [vmem:[%s894_s28 + $0x48] sm:$0xff]  ;;  %v619_v34 = vpack.c.bf16 %v237_v32, %v236_v31  ;;  %v221_v36 = vld [vmem:[%s1068_s1 + $0x58] sm:$0xff]  ;;  %v238_v37 = vld [vmem:[%s1068_s1 + $0xe0] sm:$0xff] }
  0x3a   : > { %608 = vmatprep.subr.bf16.mxu0 %v607_v14  ;;  %633 = vmatprep.subr.bf16.mxu1 %v607_v14  ;;  %v219_v30 = vld [vmem:[%s1068_s1 + $0x48] sm:$0xff]  ;;  %v621_v39 = vpack.c.bf16 %v221_v36, %v220_v35  ;;  %v222_v41 = vld [vmem:[%s1068_s1 + $0x60] sm:$0xff]  ;;  %v240_v43 = vld [vmem:[%s1068_s1 + $0xf0] sm:$0xff] }
  0x3b   : > { %313 = vmatprep.mubr.f32.mxu0 %v195_v25  ;;  %333 = vmatprep.mubr.f32.mxu1 %v203_v26  ;;  %v617_v33 = vpack.c.bf16 %v219_v30, %v218_v29  ;;  %v239_v38 = vld [vmem:[%s1068_s1 + $0xe8] sm:$0xff]  ;;  %v241_v44 = vld [vmem:[%s1068_s1 + $0xf8] sm:$0xff]  ;;  %v224_v47 = vld [vmem:[%s1068_s1 + $0x70] sm:$0xff] }
  0x3c   : > { %v623_v40 = vpack.c.bf16 %v239_v38, %v238_v37  ;;  %v223_v42 = vld [vmem:[%s1068_s1 + $0x68] sm:$0xff]  ;;  %v627_v46 = vpack.c.bf16 %v241_v44, %v240_v43  ;;  %v225_v48 = vld [vmem:[%s1068_s1 + $0x78] sm:$0xff]  ;;  %v194_v50 = vld [vmem:[%s894_s28] sm:$0xff] }
  0x3d   : > { %610 = vmatpush3.bf16.msra.mxu0 %v609_v19  ;;  %641 = vmatpush3.bf16.msra.mxu1 %v609_v19  ;;  %v625_v45 = vpack.c.bf16 %v223_v42, %v222_v41  ;;  %v629_v49 = vpack.c.bf16 %v225_v48, %v224_v47  ;;  %v202_v51 = vld [vmem:[%s894_s28 + $0x40] sm:$0xff]  ;;  %v197_v52 = vld [vmem:[%s894_s28 + $0x18] sm:$0xff]  ;;  %v196_v54 = vld [vmem:[%s894_s28 + $0x10] sm:$0xff] }
  0x3e   : > { %612 = vmatprep.subr.bf16.mxu0 %v611_v20  ;;  %634 = vmatprep.subr.bf16.mxu1 %v611_v20  ;;  %v205_v53 = vld [vmem:[%s894_s28 + $0x58] sm:$0xff]  ;;  %v204_v55 = vld [vmem:[%s894_s28 + $0x50] sm:$0xff]  ;;  %v199_v56 = vld [vmem:[%s894_s28 + $0x28] sm:$0xff] }
  0x3f   : > { %v207_v57 = vld [vmem:[%s894_s28 + $0x68] sm:$0xff]  ;;  %v198_v58 = vld [vmem:[%s894_s28 + $0x20] sm:$0xff]  ;;  %v201_v60 = vld [vmem:[%s894_s28 + $0x38] sm:$0xff] }
  0x40   : > { %v206_v59 = vld [vmem:[%s894_s28 + $0x60] sm:$0xff]  ;;  %v209_v61 = vld [vmem:[%s894_s28 + $0x78] sm:$0xff]  ;;  %v200_v62 = vld [vmem:[%s894_s28 + $0x30] sm:$0xff] }
  0x41   : > { %614 = vmatpush3.bf16.msra.mxu0 %v613_v27  ;;  %642 = vmatpush3.bf16.msra.mxu1 %v613_v27  ;;  %v208_v63 = vld [vmem:[%s894_s28 + $0x70] sm:$0xff]  ;;  %v538_v4 = vld [vmem:[%s1069_s2] ss:$0 sm:$0xff]  ;;  %s536_s28 = sshll.u32 %s526_s16, 3 }
  0x42   : > { %616 = vmatprep.subr.bf16.mxu0 %v615_v28  ;;  %635 = vmatprep.subr.bf16.mxu1 %v615_v28  ;;  %p189_p7 = scmp.lt.s32.totalorder %s536_s28, 31 }
  0x44   : > { %s1079_s28 = smov (!%p189_p7, %s536_s28), 31 }
  0x45   : > { %618 = vmatpush3.bf16.msra.mxu0 %v617_v33  ;;  %643 = vmatpush3.bf16.msra.mxu1 %v617_v33  ;;  %s537_s7 = sshll.u32 %s1079_s28, 3 }
  0x46   : > { %620 = vmatprep.subr.bf16.mxu0 %v619_v34  ;;  %636 = vmatprep.subr.bf16.mxu1 %v619_v34  ;;  %s1036_s21 = scalar_lea.vmem %s1070_s3, %s537_s7 }
  0x49   : > { %622 = vmatpush3.bf16.msra.mxu0 %v621_v39  ;;  %644 = vmatpush3.bf16.msra.mxu1 %v621_v39 }
  0x4a   : > { %624 = vmatprep.subr.bf16.mxu0 %v623_v40  ;;  %637 = vmatprep.subr.bf16.mxu1 %v623_v40 }
  0x4d   : > { %626 = vmatpush3.bf16.msra.mxu0 %v625_v45  ;;  %645 = vmatpush3.bf16.msra.mxu1 %v625_v45 }
  0x4e   : > { %628 = vmatprep.subr.bf16.mxu0 %v627_v46  ;;  %638 = vmatprep.subr.bf16.mxu1 %v627_v46 }
  0x51   : > { %630 = vmatpush3.bf16.msra.mxu0 %v629_v49  ;;  %646 = vmatpush3.bf16.msra.mxu1 %v629_v49 }
  0x54   : > { %314 = vmatmul.mubr.f32.vlgmr.msra.gmra.mrb[0].mxu0 %v194_v50  ;;  %334 = vmatmul.mubr.f32.vlgmr.msra.gmra.mrb[0].mxu1 %v202_v51 }
  0x55   : > { %318 = vmatprep.mubr.f32.mxu0 %v197_v52  ;;  %338 = vmatprep.mubr.f32.mxu1 %v205_v53 }
  0x58   : > { %319 = vmatmul.mubr.f32.gmra.mrb[2].mxu0 %v196_v54  ;;  %339 = vmatmul.mubr.f32.gmra.mrb[2].mxu1 %v204_v55 }
  0x59   : > { %323 = vmatprep.mubr.f32.mxu0 %v199_v56  ;;  %343 = vmatprep.mubr.f32.mxu1 %v207_v57 }
  0x5c   : > { %324 = vmatmul.mubr.f32.gmra.mrb[4].mxu0 %v198_v58  ;;  %344 = vmatmul.mubr.f32.gmra.mrb[4].mxu1 %v206_v59 }
  0x5d   : > { %328 = vmatprep.mubr.f32.mxu0 %v201_v60  ;;  %348 = vmatprep.mubr.f32.mxu1 %v209_v61 }
  0x60   : > { %329 = vmatmul.mubr.f32.gmra.mrb[6].mxu0 %v200_v62  ;;  %349 = vmatmul.mubr.f32.gmra.mrb[6].mxu1 %v208_v63 }
 0x127   : > { %v575_v0 = vpop.f32.mrb[0].mxu0  ;;  %v587_v1 = vpop.f32.mrb[0].mxu1 }
 0x128   : > { %v576_v2 = vpop.f32.mrb[1].mxu0  ;;  %v588_v3 = vpop.f32.mrb[1].mxu1 }
 0x129   : > { %v577_v5 = vadd.f32 %v576_v2, %v575_v0  ;;  %v589_v6 = vadd.f32 %v588_v3, %v587_v1 }
 0x12b   : > { %v590_v7 = vpop.f32.mrb[2].mxu1  ;;  %v578_v8 = vpop.f32.mrb[2].mxu0  ;;  %v316_v9 = vadd.f32 %v577_v5, %v538_v4  ;;  %v336_v10 = vadd.f32 %v589_v6, %v538_v4 }
 0x12c   : > { %v591_v11 = vpop.f32.mrb[3].mxu1  ;;  %v579_v12 = vpop.f32.mrb[3].mxu0 }
 0x12d   : > { %v592_v13 = vadd.f32 %v591_v11, %v590_v7  ;;  %v580_v14 = vadd.f32 %v579_v12, %v578_v8  ;;  %v355_v15 = vsel %vm354_vm0, %v316_v9, -inf  ;;  %v367_v18 = vsel %vm354_vm0, %v336_v10, -inf }
 0x12e   : > { %356 = vmax.xlane.f32.xlu0 %v355_v15 }
 0x12f   : > { %v581_v16 = vpop.f32.mrb[4].mxu0  ;;  %v341_v17 = vadd.f32 %v592_v13, %v538_v4  ;;  %v593_v19 = vpop.f32.mrb[4].mxu1  ;;  %v321_v20 = vadd.f32 %v580_v14, %v538_v4 }
 0x130   : > { %v582_v21 = vpop.f32.mrb[5].mxu0  ;;  %v594_v22 = vpop.f32.mrb[5].mxu1 }
 0x131   : > { %v583_v23 = vadd.f32 %v582_v21, %v581_v16  ;;  %v370_v24 = vsel %vm354_vm0, %v341_v17, -inf  ;;  %v595_v25 = vadd.f32 %v594_v22, %v593_v19  ;;  %v358_v28 = vsel %vm354_vm0, %v321_v20, -inf }
 0x132   : > { %371 = vmax.xlane.f32.xlu1 %v370_v24  ;;  %368 = vmax.xlane.f32.xlu0 %v367_v18 }
 0x133   : > { %v584_v26 = vpop.f32.mrb[6].mxu0  ;;  %v326_v27 = vadd.f32 %v583_v23, %v538_v4  ;;  %v596_v29 = vpop.f32.mrb[6].mxu1  ;;  %v346_v30 = vadd.f32 %v595_v25, %v538_v4 }
 0x134   : > { %v585_v31 = vpop.f32.mrb[7].mxu0  ;;  %v597_v32 = vpop.f32.mrb[7].mxu1 }
 0x135   : > { %v586_v33 = vadd.f32 %v585_v31, %v584_v26  ;;  %v361_v34 = vsel %vm354_vm0, %v326_v27, -inf  ;;  %v598_v35 = vadd.f32 %v597_v32, %v596_v29  ;;  %v373_v37 = vsel %vm354_vm0, %v346_v30, -inf }
 0x136   : > { %362 = vmax.xlane.f32.xlu1 %v361_v34  ;;  %359 = vmax.xlane.f32.xlu0 %v358_v28 }
 0x137   : > { %v331_v36 = vadd.f32 %v586_v33, %v538_v4  ;;  %v351_v38 = vadd.f32 %v598_v35, %v538_v4 }
 0x139   : > { %v364_v39 = vsel %vm354_vm0, %v331_v36, -inf  ;;  %v376_v40 = vsel %vm354_vm0, %v351_v38, -inf }
 0x13a   : > { %365 = vmax.xlane.f32.xlu1 %v364_v39  ;;  %374 = vmax.xlane.f32.xlu0 %v373_v37 }
 0x13e   : > { %377 = vmax.xlane.f32.xlu1 %v376_v40 }
 0x1bb   : > { %v357_v41 = vpop.xlane.xlu0 %356 }
 0x1bc   : > { %v379_v42 = vsub.f32 %v316_v9, %v357_v41 }
 0x1be   : > { %v387_v43 = vmul.f32 1.442695, %v379_v42 }
 0x1bf   : > { %v372_v44 = vpop.xlane.xlu1 %371  ;;  %v369_v45 = vpop.xlane.xlu0 %368 }
 0x1c0   : > { %688 = vpow2.f32 %v387_v43  ;;  %v383_v46 = vsub.f32 %v336_v10, %v369_v45  ;;  %v384_v48 = vsub.f32 %v341_v17, %v372_v44 }
 0x1c2   : > { %v395_v47 = vmul.f32 1.442695, %v383_v46  ;;  %v397_v55 = vmul.f32 1.442695, %v384_v48 }
 0x1c3   : > { %v363_v49 = vpop.xlane.xlu1 %362  ;;  %v360_v50 = vpop.xlane.xlu0 %359 }
 0x1c4   : > { %v381_v51 = vsub.f32 %v326_v27, %v363_v49  ;;  %v380_v52 = vsub.f32 %v321_v20, %v360_v50  ;;  %690 = vpow2.f32 %v395_v47 }
 0x1c6   : > { %v391_v53 = vmul.f32 1.442695, %v381_v51  ;;  %v389_v54 = vmul.f32 1.442695, %v380_v52 }
 0x1c7   : > { %v366_v56 = vpop.xlane.xlu1 %365  ;;  %v375_v57 = vpop.xlane.xlu0 %374 }
 0x1c8   : > { %692 = vpow2.f32 %v391_v53  ;;  %v382_v58 = vsub.f32 %v331_v36, %v366_v56  ;;  %v385_v59 = vsub.f32 %v346_v30, %v375_v57 }
 0x1c9   : > { %694 = vpow2.f32 %v389_v54 }
 0x1ca   : > { %v689_v60 = vpop.eup %688  ;;  %v399_v61 = vmul.f32 1.442695, %v385_v59  ;;  %696 = vpow2.f32 %v397_v55  ;;  %v393_v62 = vmul.f32 1.442695, %v382_v58 }
 0x1cb   : > { %v378_v63 = vpop.xlane.xlu1 %377  ;;  %v403_v0 = vsel %vm354_vm0, %v689_v60, 0.0 }
 0x1cc   : > { %v386_v1 = vsub.f32 %v351_v38, %v378_v63  ;;  %404 = vadd.xlane.f32.xlu0 %v403_v0  ;;  %698 = vpow2.f32 %v399_v61 }
 0x1cd   : > { %700 = vpow2.f32 %v393_v62 }
 0x1ce   : > { %v691_v2 = vpop.eup %690  ;;  %v401_v3 = vmul.f32 1.442695, %v386_v1 }
 0x1cf   : > { %v415_v4 = vsel %vm354_vm0, %v691_v2, 0.0 }
 0x1d0   : > { %416 = vadd.xlane.f32.xlu0 %v415_v4  ;;  %702 = vpow2.f32 %v401_v3 }
 0x1d2   : > { %v693_v5 = vpop.eup %692 }
 0x1d3   : > { %v695_v6 = vpop.eup %694  ;;  %v409_v7 = vsel %vm354_vm0, %v693_v5, 0.0 }
 0x1d4   : > { %v406_v8 = vsel %vm354_vm0, %v695_v6, 0.0  ;;  %v697_v9 = vpop.eup %696  ;;  %410 = vadd.xlane.f32.xlu0 %v409_v7 }
 0x1d5   : > { %407 = vadd.xlane.f32.xlu1 %v406_v8  ;;  %v418_v11 = vsel %vm354_vm0, %v697_v9, 0.0 }
 0x1d6   : > { %v699_v10 = vpop.eup %698 }
 0x1d7   : > { %v421_v12 = vsel %vm354_vm0, %v699_v10, 0.0  ;;  %v701_v13 = vpop.eup %700 }
 0x1d8   : > { %422 = vadd.xlane.f32.xlu0 %v421_v12  ;;  %v412_v14 = vsel %vm354_vm0, %v701_v13, 0.0 }
 0x1d9   : > { %419 = vadd.xlane.f32.xlu1 %v418_v11 }
 0x1da   : > { %v703_v15 = vpop.eup %702 }
 0x1db   : > { %v424_v16 = vsel %vm354_vm0, %v703_v15, 0.0 }
 0x1dd   : > { %413 = vadd.xlane.f32.xlu1 %v412_v14 }
 0x1e1   : > { %425 = vadd.xlane.f32.xlu1 %v424_v16 }
 0x259   : > { %v405_v17 = vpop.xlane.xlu0 %404 }
 0x25a   : > { %704 = vrcp.f32 %v405_v17 }
 0x25d   : > { %v417_v18 = vpop.xlane.xlu0 %416 }
 0x25e   : > { %706 = vrcp.f32 %v417_v18 }
 0x261   : > { %v411_v20 = vpop.xlane.xlu0 %410 }
 0x262   : > { %v408_v19 = vpop.xlane.xlu1 %407 }
 0x263   : > { %708 = vrcp.f32 %v408_v19 }
 0x264   : > { %v705_v21 = vpop.eup %704  ;;  %710 = vrcp.f32 %v411_v20 }
 0x265   : > { %v443_v22 = vmul.f32 %v705_v21, %v689_v60  ;;  %v423_v24 = vpop.xlane.xlu0 %422 }
 0x266   : > { %v420_v23 = vpop.xlane.xlu1 %419 }
 0x267   : > { %451 = vst.msk [vmem:[%s1036_s21] sm:$0xff] %vm354_vm0, %v443_v22  ;;  %712 = vrcp.f32 %v420_v23 }
 0x268   : > { %714 = vrcp.f32 %v423_v24  ;;  %v707_v25 = vpop.eup %706 }
 0x269   : > { %v447_v26 = vmul.f32 %v707_v25, %v691_v2 }
 0x26a   : > { %v414_v27 = vpop.xlane.xlu1 %413 }
 0x26b   : > { %716 = vrcp.f32 %v414_v27  ;;  %455 = vst.msk [vmem:[%s1036_s21 + $0x20] sm:$0xff] %vm354_vm0, %v447_v26 }
 0x26d   : > { %v709_v28 = vpop.eup %708 }
 0x26e   : > { %v711_v29 = vpop.eup %710  ;;  %v444_v30 = vmul.f32 %v709_v28, %v695_v6  ;;  %v426_v31 = vpop.xlane.xlu1 %425 }
 0x26f   : > { %v445_v32 = vmul.f32 %v711_v29, %v693_v5  ;;  %718 = vrcp.f32 %v426_v31 }
 0x270   : > { %452 = vst.msk [vmem:[%s1036_s21 + $0x8] sm:$0xff] %vm354_vm0, %v444_v30 }
 0x271   : > { %v713_v33 = vpop.eup %712  ;;  %453 = vst.msk [vmem:[%s1036_s21 + $0x10] sm:$0xff] %vm354_vm0, %v445_v32 }
 0x272   : > { %v715_v34 = vpop.eup %714  ;;  %v448_v35 = vmul.f32 %v713_v33, %v697_v9 }
 0x273   : > { %v449_v36 = vmul.f32 %v715_v34, %v699_v10 }
 0x274   : > { %456 = vst.msk [vmem:[%s1036_s21 + $0x28] sm:$0xff] %vm354_vm0, %v448_v35 }
 0x275   : > { %v717_v37 = vpop.eup %716  ;;  %457 = vst.msk [vmem:[%s1036_s21 + $0x30] sm:$0xff] %vm354_vm0, %v449_v36 }
 0x276   : > { %v446_v38 = vmul.f32 %v717_v37, %v701_v13 }
 0x278   : > { %454 = vst.msk [vmem:[%s1036_s21 + $0x18] sm:$0xff] %vm354_vm0, %v446_v38 }
 0x279   : > { %v719_v39 = vpop.eup %718 }
 0x27a   : > { %v450_v40 = vmul.f32 %v719_v39, %v703_v15 }
 0x27c   : > { %458 = vst.msk [vmem:[%s1036_s21 + $0x38] sm:$0xff] %vm354_vm0, %v450_v40 }
 0x27d PF: > { %p13_p8 = scmp.ge.s32.totalorder %s829_s17, 6   ;;  %s1074_s12 = smov %s776_s13 }
 0x27e   : > { %s1075_s13 = smov %s780_s14  ;;  %s1076_s14 = smov %s839_s20 }
 0x27f   : > { %s1077_s15 = smov %s829_s17  ;;  %15 = sbr.rel (!%p13_p8) target bundleno = 3 (0x3), region = 72 }
 0x286   :  { %481 = vsyncpa [#allocation3], 1 }
 0x287   :  { %483 = vsyncpa [#allocation3 + $0x1], 1 }

</bundles_post_ra>
